<compile_context>
chip_gen: v7x
topology: tpu7x:2x2x1
jax: 0.10.0
libtpu: 0.0.40
codegen_flags: <defaults>
</compile_context>

<pallas_src>
import functools

import jax
import jax.numpy as jnp
from jax.experimental import pallas as pl
from jax.experimental.pallas import tpu as pltpu


def _cdiv(a, b):
    return -(-a // b)


def _round_up(a, b):
    return _cdiv(a, b) * b


def _static_int_pow(x, n):
    """x ** n for a static non-negative integer n (trace-time multiply chain)."""
    if n == 0:
        return jnp.ones_like(x)
    result = None
    base = x
    while n > 0:
        if n & 1:
            result = base if result is None else result * base
        n >>= 1
        if n:
            base = base * base
    return result


def _focal_loss_kernel(logits_ref, targets_ref, w_ref, out_ref, *,
                       gamma, int_gamma, n_valid, tile_n, steps, tiles_real,
                       has_partial, has_phantom):
    p = pl.program_id(0)   # parallel part (TensorCore shard)
    i = pl.program_id(1)   # batch-tile reduction step
    tile_idx = p * steps + i

    @pl.when(i == 0)
    def _():
        out_ref[...] = jnp.zeros_like(out_ref)

    def accumulate():
        x = logits_ref[...].astype(jnp.float32)   # (TN, C), upcast on load
        t = targets_ref[...]                      # (TN, 1) int32
        w = w_ref[...]                            # (C, 1) f32
        num_classes = x.shape[1]
        ones_c = jnp.ones((num_classes, 1), jnp.float32)

        # numerically stable LSE: row max on XLU, denominator sum on the MXU
        m = jnp.max(x, axis=-1, keepdims=True)                              # (TN, 1)
        e = jnp.exp(x - m)                                                  # EUP
        denom = jnp.dot(e, ones_c, preferred_element_type=jnp.float32,
                        precision=jax.lax.Precision.HIGHEST)                # (TN, 1)
        lse = jnp.log(denom) + m

        # target logit / target class weight gathered via one-hot matmuls (MXU)
        cls = jax.lax.broadcasted_iota(jnp.int32, x.shape, 1)               # (TN, C)
        onehot = (cls == t).astype(jnp.float32)                             # (TN, C)
        x_t = jnp.dot(x * onehot, ones_c, preferred_element_type=jnp.float32,
                      precision=jax.lax.Precision.HIGHEST)                  # (TN, 1)
        w_t = jnp.dot(onehot, w, preferred_element_type=jnp.float32,
                      precision=jax.lax.Precision.HIGHEST)                  # (TN, 1)

        # weighted per-sample CE (reduction='none'), focal modulation
        ce = w_t * (lse - x_t)                                              # (TN, 1)
        pt = jnp.exp(-ce)
        omp = jnp.maximum(1.0 - pt, 0.0)   # clamp fp-rounding negatives
        if int_gamma is not None:
            mod = _static_int_pow(omp, int_gamma)   # pure VPU multiplies
        else:
            mod = omp ** gamma
        fl = mod * ce                     # alpha hoisted to the wrapper

        if has_partial:
            # only the last real tile straddles N; full tiles skip the mask
            is_partial_tile = tile_idx == tiles_real - 1

            @pl.when(is_partial_tile)
            def _():
                rows = (jax.lax.broadcasted_iota(jnp.int32, fl.shape, 0)
                        + tile_idx * tile_n)
                out_ref[...] += jnp.sum(jnp.where(rows < n_valid, fl, 0.0))

            @pl.when(jnp.logical_not(is_partial_tile))
            def _():
                out_ref[...] += jnp.sum(fl)
        else:
            out_ref[...] += jnp.sum(fl)

    if has_phantom:
        # odd tile count split over 2 parts: skip the one redundant step
        pl.when(tile_idx < tiles_real)(accumulate)
    else:
        accumulate()


def focal_loss(logits, targets, *, alpha=1.0, gamma=2.0, weight=None, tile_n=None):
    """Pallas TPU focal loss. logits: (N, C) f32/bf16, targets: (N,) int."""
    N, C = logits.shape

    if weight is None:
        w_col = jnp.ones((C, 1), dtype=jnp.float32)
    else:
        w_col = jnp.asarray(weight, dtype=jnp.float32).reshape(C, 1)
    targets2d = targets.reshape(N, 1).astype(jnp.int32)

    in_isz = jnp.dtype(logits.dtype).itemsize
    pack = max(8, 32 // in_isz)                 # sublane packing: 8 f32, 16 bf16
    c_lanes = _round_up(C, 128)                 # lane-padded class width

    # ---- generation-aware VMEM budget (v5e/v6e: 128 MiB, v7x: 64 MiB) ----
    try:
        info = pltpu.get_tpu_info()
        vmem_cap = int(getattr(info, "vmem_capacity_bytes", 64 * 1024 * 1024))
    except Exception:
        vmem_cap = 64 * 1024 * 1024
    vmem_limit = min(64 * 1024 * 1024, max(16 * 1024 * 1024, vmem_cap // 2))

    if tile_n is None:
        # per-row bytes: double-buffered logits + double-buffered lane-padded
        # (tile_n,1)->(tile_n,128) targets + ~4 live f32 (TN, C) temporaries.
        per_row = 2 * c_lanes * in_isz + 2 * 128 * 4 + 4 * c_lanes * 4
        tile_n = int((vmem_limit * 0.7) // per_row)
        tile_n = min(tile_n, 8192)
    tile_n = max(pack, (int(tile_n) // pack) * pack)
    tile_n = min(tile_n, _round_up(N, pack))    # don't over-pad tiny batches
    if N > pack and _cdiv(N, tile_n) < 2:       # keep both v7x TensorCores busy
        tile_n = max(pack, _round_up(_cdiv(N, 2), pack))

    tiles_real = _cdiv(N, tile_n)
    parts = 2 if tiles_real >= 2 else 1
    steps = _cdiv(tiles_real, parts)
    has_phantom = parts * steps > tiles_real
    has_partial = (N % tile_n) != 0

    g = float(gamma)
    int_gamma = int(g) if (g.is_integer() and g >= 0) else None

    kernel = functools.partial(
        _focal_loss_kernel,
        gamma=g, int_gamma=int_gamma, n_valid=N, tile_n=tile_n,
        steps=steps, tiles_real=tiles_real,
        has_partial=has_partial, has_phantom=has_phantom)

    last_tile = tiles_real - 1

    def tiled_map(p, i):
        idx = p * steps + i
        if has_phantom:
            idx = jnp.minimum(idx, last_tile)   # keep the redundant step in-bounds
        return (idx, 0)

    out = pl.pallas_call(
        kernel,
        out_shape=jax.ShapeDtypeStruct((parts * 8, 128), jnp.float32),
        grid_spec=pltpu.PrefetchScalarGridSpec(
            num_scalar_prefetch=0,
            grid=(parts, steps),
            in_specs=[
                pl.BlockSpec((tile_n, C), tiled_map),          # logits (caller dtype)
                pl.BlockSpec((tile_n, 1), tiled_map),          # targets
                pl.BlockSpec((C, 1), lambda p, i: (0, 0)),     # class-weight column
            ],
            out_specs=pl.BlockSpec((8, 128), lambda p, i: (p, 0)),  # per-part sums
        ),
        compiler_params=pltpu.CompilerParams(
            dimension_semantics=("parallel", "arbitrary"),
            vmem_limit_bytes=vmem_limit,
        ),
    )(logits, targets2d, w_col)

    partial_sums = out[0::8, 0]                      # one value per (8,128) part block
    return float(alpha) * jnp.sum(partial_sums) / float(N)   # plain mean over N


def _focal_loss_ref(logits, targets, alpha=1.0, gamma=2.0, weight=None):
    logp = jax.nn.log_softmax(logits.astype(jnp.float32), axis=-1)
    ce = -jnp.take_along_axis(logp, targets[:, None].astype(jnp.int32), axis=-1)[:, 0]
    if weight is not None:
        ce = ce * weight[targets]
    pt = jnp.exp(-ce)
    return jnp.mean(alpha * (1.0 - pt) ** gamma * ce)


if __name__ == "__main__":
    key = jax.random.PRNGKey(0)
    k_logits, k_targets, k_w, k_b = jax.random.split(key, 4)

    # small ragged batch (partial-tile mask path) with a small class count
    N, C = 37, 10
    logits = jax.random.normal(k_logits, (N, C), dtype=jnp.float32)
    targets = jax.random.randint(k_targets, (N,), 0, C, dtype=jnp.int32)
    weight = jax.random.uniform(k_w, (C,), minval=0.5, maxval=1.5, dtype=jnp.float32)

    # unweighted, default (auto) tile
    loss = jax.block_until_ready(focal_loss(logits, targets, alpha=1.0, gamma=2.0))
    ref = _focal_loss_ref(logits, targets, alpha=1.0, gamma=2.0)
    assert jnp.allclose(loss, ref, rtol=1e-4, atol=1e-6), (loss, ref)

    # class-weighted
    loss_w = jax.block_until_ready(
        focal_loss(logits, targets, alpha=0.75, gamma=2.0, weight=weight))
    ref_w = _focal_loss_ref(logits, targets, alpha=0.75, gamma=2.0, weight=weight)
    assert jnp.allclose(loss_w, ref_w, rtol=1e-4, atol=1e-6), (loss_w, ref_w)

    # small tiles -> odd tile count over 2 parts (clamped phantom step + mask)
    loss_t = jax.block_until_ready(
        focal_loss(logits, targets, alpha=1.0, gamma=2.0, weight=weight, tile_n=16))
    ref_t = _focal_loss_ref(logits, targets, alpha=1.0, gamma=2.0, weight=weight)
    assert jnp.allclose(loss_t, ref_t, rtol=1e-4, atol=1e-6), (loss_t, ref_t)

    # bf16 logits streamed straight from HBM (no wrapper-side upcast copy)
    Nb, Cb = 64, 128
    logits_b = jax.random.normal(k_b, (Nb, Cb), dtype=jnp.float32).astype(jnp.bfloat16)
    targets_b = jax.random.randint(k_targets, (Nb,), 0, Cb, dtype=jnp.int32)
    loss_b = jax.block_until_ready(focal_loss(logits_b, targets_b, alpha=1.0, gamma=2.0))
    ref_b = _focal_loss_ref(logits_b.astype(jnp.float32), targets_b, alpha=1.0, gamma=2.0)
    assert jnp.allclose(loss_b, ref_b, rtol=1e-4, atol=1e-6), (loss_b, ref_b)

    print("KERNEL_OK")
</pallas_src>

<mosaic_0001>
module attributes {stable_mosaic.version = 11 : i64} {
  func.func @_focal_loss_kernel(%arg0: i32, %arg1: i32, %arg2: memref<24x10xf32, #tpu.memory_space<vmem>>, %arg3: memref<24x1xi32, #tpu.memory_space<vmem>>, %arg4: memref<10x1xf32, #tpu.memory_space<vmem>>, %arg5: memref<8x128xf32, #tpu.memory_space<vmem>>) attributes {dimension_semantics = [#tpu.dimension_semantics<parallel>, #tpu.dimension_semantics<arbitrary>], iteration_bounds = array<i64: 2, 1>, scalar_prefetch = 0 : i64, scratch_operands = 0 : i64, tpu.core_type = #tpu.core_type<tc>, window_params = [{transform_indices = @transform_0, window_bounds = array<i64: 24, 10>}, {transform_indices = @transform_1, window_bounds = array<i64: 24, 1>}, {pipeline_mode = #tpu.pipeline_mode<synchronous>, transform_indices = @transform_2, window_bounds = array<i64: 10, 1>}, {transform_indices = @transform_3, window_bounds = array<i64: 8, 128>}]} {
    %c1_i32 = arith.constant 1 : i32
    %0 = arith.muli %arg0, %c1_i32 : i32
    %1 = arith.addi %0, %arg1 : i32
    %c0_i32 = arith.constant 0 : i32
    %2 = arith.cmpi eq, %arg1, %c0_i32 : i32
    %3 = arith.extui %2 : i1 to i32
    %c0_i32_0 = arith.constant 0 : i32
    %4 = arith.cmpi ne, %3, %c0_i32_0 : i32
    scf.if %4 {
      %cst_16 = arith.constant 0.000000e+00 : f32
      %42 = vector.broadcast %cst_16 : f32 to vector<8x128xf32>
      %c0_17 = arith.constant 0 : index
      %c0_18 = arith.constant 0 : index
      %43 = vector.load %arg5[%c0_17, %c0_18] : memref<8x128xf32, #tpu.memory_space<vmem>>, vector<8x128xf32>
      tpu.vector_store %arg5[%c0_17, %c0_18], %42 {strides = array<i32>} : memref<8x128xf32, #tpu.memory_space<vmem>>, vector<8x128xf32>,
    } else {
    }
    %c0 = arith.constant 0 : index
    %c0_1 = arith.constant 0 : index
    %5 = vector.load %arg2[%c0, %c0_1] : memref<24x10xf32, #tpu.memory_space<vmem>>, vector<24x10xf32>
    %c0_2 = arith.constant 0 : index
    %c0_3 = arith.constant 0 : index
    %6 = vector.load %arg3[%c0_2, %c0_3] : memref<24x1xi32, #tpu.memory_space<vmem>>, vector<24x1xi32>
    %c0_4 = arith.constant 0 : index
    %c0_5 = arith.constant 0 : index
    %7 = vector.load %arg4[%c0_4, %c0_5] : memref<10x1xf32, #tpu.memory_space<vmem>>, vector<10x1xf32>
    %cst = arith.constant 1.000000e+00 : f32
    %8 = vector.broadcast %cst : f32 to vector<10x1xf32>
    %cst_6 = arith.constant dense<0xFF800000> : vector<24xf32>
    %9 = vector.multi_reduction <maximumf>, %5, %cst_6 [1] : vector<24x10xf32> to vector<24xf32>
    %10 = vector.shape_cast %9 : vector<24xf32> to vector<24x1xf32>
    %11 = vector.broadcast %10 : vector<24x1xf32> to vector<24x10xf32>
    %12 = arith.subf %5, %11 : vector<24x10xf32>
    %13 = math.exp %12 : vector<24x10xf32>
    %cst_7 = arith.constant dense<0.000000e+00> : vector<24x1xf32>
    %14 = tpu.matmul %13, %8, %cst_7 {dimension_numbers = #tpu.dot_dimension_numbers<[1], [0], [0], [1], [0, 0, 1, 1], [], []>, precision = #tpu.contract_precision<fp32>} : vector<24x10xf32>, vector<10x1xf32>, vector<24x1xf32> -> vector<24x1xf32>
    %15 = math.log %14 : vector<24x1xf32>
    %16 = arith.addf %15, %10 : vector<24x1xf32>
    %17 = tpu.iota {dimensions = array<i32: 1>} : vector<24x10xi32>
    %18 = vector.broadcast %6 : vector<24x1xi32> to vector<24x10xi32>
    %19 = arith.cmpi eq, %17, %18 : vector<24x10xi32>
    %20 = arith.extui %19 : vector<24x10xi1> to vector<24x10xi32>
    %21 = arith.sitofp %20 : vector<24x10xi32> to vector<24x10xf32>
    %22 = arith.mulf %5, %21 : vector<24x10xf32>
    %cst_8 = arith.constant dense<0.000000e+00> : vector<24x1xf32>
    %23 = tpu.matmul %22, %8, %cst_8 {dimension_numbers = #tpu.dot_dimension_numbers<[1], [0], [0], [1], [0, 0, 1, 1], [], []>, precision = #tpu.contract_precision<fp32>} : vector<24x10xf32>, vector<10x1xf32>, vector<24x1xf32> -> vector<24x1xf32>
    %cst_9 = arith.constant dense<0.000000e+00> : vector<24x1xf32>
    %24 = tpu.matmul %21, %7, %cst_9 {dimension_numbers = #tpu.dot_dimension_numbers<[1], [0], [0], [1], [0, 0, 1, 1], [], []>, precision = #tpu.contract_precision<fp32>} : vector<24x10xf32>, vector<10x1xf32>, vector<24x1xf32> -> vector<24x1xf32>
    %25 = arith.subf %16, %23 : vector<24x1xf32>
    %26 = arith.mulf %24, %25 : vector<24x1xf32>
    %cst_10 = arith.constant 0.000000e+00 : f32
    %27 = vector.broadcast %cst_10 : f32 to vector<24x1xf32>
    %28 = arith.subf %27, %26 : vector<24x1xf32>
    %29 = math.exp %28 : vector<24x1xf32>
    %cst_11 = arith.constant 1.000000e+00 : f32
    %30 = vector.broadcast %cst_11 : f32 to vector<24x1xf32>
    %31 = arith.subf %30, %29 : vector<24x1xf32>
    %cst_12 = arith.constant 0.000000e+00 : f32
    %32 = vector.broadcast %cst_12 : f32 to vector<24x1xf32>
    %33 = arith.maximumf %31, %32 : vector<24x1xf32>
    %34 = arith.mulf %33, %33 : vector<24x1xf32>
    %35 = arith.mulf %34, %26 : vector<24x1xf32>
    %c1_i32_13 = arith.constant 1 : i32
    %36 = arith.cmpi eq, %1, %c1_i32_13 : i32
    %37 = arith.extui %36 : i1 to i32
    %c0_i32_14 = arith.constant 0 : i32
    %38 = arith.cmpi ne, %37, %c0_i32_14 : i32
    scf.if %38 {
      %42 = tpu.iota {dimensions = array<i32: 0>} : vector<24x1xi32>
      %c24_i32 = arith.constant 24 : i32
      %43 = arith.muli %1, %c24_i32 : i32
      %44 = vector.broadcast %43 : i32 to vector<24x1xi32>
      %45 = arith.addi %42, %44 : vector<24x1xi32>
      %c0_16 = arith.constant 0 : index
      %c0_17 = arith.constant 0 : index
      %46 = vector.load %arg5[%c0_16, %c0_17] : memref<8x128xf32, #tpu.memory_space<vmem>>, vector<8x128xf32>
      %c37_i32 = arith.constant 37 : i32
      %47 = vector.broadcast %c37_i32 : i32 to vector<24x1xi32>
      %48 = arith.cmpi slt, %45, %47 : vector<24x1xi32>
      %cst_18 = arith.constant 0.000000e+00 : f32
      %49 = vector.broadcast %cst_18 : f32 to vector<24x1xf32>
      %50 = arith.select %48, %35, %49 : vector<24x1xi1>, vector<24x1xf32>
      %51 = vector.shape_cast %50 : vector<24x1xf32> to vector<1x24x1xf32>
      %cst_19 = arith.constant dense<0.000000e+00> : vector<1xf32>
      %52 = vector.multi_reduction <add>, %51, %cst_19 [1, 2] : vector<1x24x1xf32> to vector<1xf32>
      %53 = vector.shape_cast %52 : vector<1xf32> to vector<1x1x1xf32>
      %54 = vector.extract %53[0, 0, 0] : f32 from vector<1x1x1xf32>
      %55 = vector.broadcast %54 : f32 to vector<8x128xf32>
      %56 = arith.addf %46, %55 : vector<8x128xf32>
      %c0_20 = arith.constant 0 : index
      %c0_21 = arith.constant 0 : index
      %57 = vector.load %arg5[%c0_20, %c0_21] : memref<8x128xf32, #tpu.memory_space<vmem>>, vector<8x128xf32>
      tpu.vector_store %arg5[%c0_20, %c0_21], %56 {strides = array<i32>} : memref<8x128xf32, #tpu.memory_space<vmem>>, vector<8x128xf32>,
    } else {
    }
    %true = arith.constant true
    %39 = arith.xori %36, %true : i1
    %40 = arith.extui %39 : i1 to i32
    %c0_i32_15 = arith.constant 0 : i32
    %41 = arith.cmpi ne, %40, %c0_i32_15 : i32
    scf.if %41 {
      %c0_16 = arith.constant 0 : index
      %c0_17 = arith.constant 0 : index
      %42 = vector.load %arg5[%c0_16, %c0_17] : memref<8x128xf32, #tpu.memory_space<vmem>>, vector<8x128xf32>
      %43 = vector.shape_cast %35 : vector<24x1xf32> to vector<1x24x1xf32>
      %cst_18 = arith.constant dense<0.000000e+00> : vector<1xf32>
      %44 = vector.multi_reduction <add>, %43, %cst_18 [1, 2] : vector<1x24x1xf32> to vector<1xf32>
      %45 = vector.shape_cast %44 : vector<1xf32> to vector<1x1x1xf32>
      %46 = vector.extract %45[0, 0, 0] : f32 from vector<1x1x1xf32>
      %47 = vector.broadcast %46 : f32 to vector<8x128xf32>
      %48 = arith.addf %42, %47 : vector<8x128xf32>
      %c0_19 = arith.constant 0 : index
      %c0_20 = arith.constant 0 : index
      %49 = vector.load %arg5[%c0_19, %c0_20] : memref<8x128xf32, #tpu.memory_space<vmem>>, vector<8x128xf32>
      tpu.vector_store %arg5[%c0_19, %c0_20], %48 {strides = array<i32>} : memref<8x128xf32, #tpu.memory_space<vmem>>, vector<8x128xf32>,
    } else {
    }
    return
  }
  func.func @transform_0(%arg0: i32, %arg1: i32) -> (i32, i32) {
    %c1_i32 = arith.constant 1 : i32
    %0 = arith.muli %arg0, %c1_i32 : i32
    %1 = arith.addi %0, %arg1 : i32
    %c0_i32 = arith.constant 0 : i32
    %c0_i32_0 = arith.constant 0 : i32
    return %1, %c0_i32 : i32, i32
  }
  func.func @transform_1(%arg0: i32, %arg1: i32) -> (i32, i32) {
    %c1_i32 = arith.constant 1 : i32
    %0 = arith.muli %arg0, %c1_i32 : i32
    %1 = arith.addi %0, %arg1 : i32
    %c0_i32 = arith.constant 0 : i32
    %c0_i32_0 = arith.constant 0 : i32
    return %1, %c0_i32 : i32, i32
  }
  func.func @transform_2(%arg0: i32, %arg1: i32) -> (i32, i32) {
    %c0_i32 = arith.constant 0 : i32
    %c0_i32_0 = arith.constant 0 : i32
    %c0_i32_1 = arith.constant 0 : i32
    return %c0_i32, %c0_i32_0 : i32, i32
  }
  func.func @transform_3(%arg0: i32, %arg1: i32) -> (i32, i32) {
    %c0_i32 = arith.constant 0 : i32
    %c0_i32_0 = arith.constant 0 : i32
    return %arg0, %c0_i32 : i32, i32
  }
}

</mosaic_0001>

<bundles_post_ra>
// kernel: tpu_custom_call.1
= control target key start
LH: loop header
LB: loop body
LE: loop exit
PB: predicated region body
PF: predicated region fallthrough
CT: control target
= control target key end

     0   :  { %8 = vsyncpa [#allocation3], 0  ;;  %s3335_s0 = inlined_call_operand.vmem [shape: f32[37,10], index: 0, kind: input, shape index: {}]   ;;  %s3336_s1 = inlined_call_operand.vmem [shape: s32[37,1], index: 1, kind: input, shape index: {}]   ;;  %s3337_s2 = inlined_call_operand.vmem [shape: f32[10,1], index: 2, kind: input, shape index: {}]   ;;  %s3338_s3 = inlined_call_operand.hbm [shape: f32[16,128], index: 3, kind: output, shape index: {}]  }
   0x1   :  { %10 = vsyncpa [#allocation3 + $0x1], 0  ;;  %s2837_s12 = smov 0   ;;  %s2839_s13 = smov 0  }
   0x2   :  { %s2841_s14 = smov 0   ;;  %s2843_s15 = smov 0  }
   0x3   :  { %s2845_s16 = smov 0   ;;  %s2847_s17 = smov 0  }
   0x4 LB: > { %s2148_s18 = sadd.s32 4294967295, %s2808_s17   ;;  %s2149_s19 = sadd.s32 4294967294, %s2808_s17   ;;  %s2808_s17 = sphi %s2847_s17, %s16_s17   ;;  %s2804_s16 = sphi %s2845_s16, %s3347_s16   ;;  %s2800_s15 = sphi %s2843_s15, %s3346_s15   ;;  %s2796_s14 = sphi %s2841_s14, %s3345_s14   ;;  %s2792_s13 = sphi %s2839_s13, %s3344_s13   ;;  %s2788_s12 = sphi %s2837_s12, %s3343_s12  }
   0x5   : > { %s28_s20 = sadd.s32 1, %s2804_s16  ;;  %s112_s21 = sadd.s32 1, %s2796_s14 }
   0x6   : > { %p30_p0 = scmp.ge.s32.totalorder %s28_s20, 2  ;;  %p122_p1 = scmp.ne.s32.totalorder %s2796_s14, %s2792_s13 }
   0x7   : > { %p123_p2 = scmp.eq.s32.totalorder %s2148_s18, 1  ;;  %p128_p3 = scmp.ne.s32.totalorder %s2792_s13, %s2788_s12 }
   0x8   : > { %s3349_s20 = smov (%p30_p0, %s28_s20), 0  ;;  %p129_p5 = scmp.eq.s32.totalorder %s2149_s19, 1 }
   0x9   : > { %p2877_p4 = por %p123_p2, %p122_p1  ;;  %s109_s23 = ssub.s32 %s2804_s16, %s3349_s20 }
   0xa   : > { %p2152_p6 = scmp.ge.s32.totalorder %s2808_s17, 1  ;;  %p110_p7 = scmp.eq.s32.totalorder %s109_s23, 0 }
   0xb   : > { %p2884_p8 = por %p129_p5, %p128_p3  ;;  %p188_p9 = scmp.lt.s32.totalorder %s2808_s17, 3 }
   0xc   : > { %s2890_s25 = scalar_select %p110_p7, %s2796_s14, %s112_s21  }
   0xd   : > { %p189_p10 = pnand %p2152_p6, %p188_p9 }
   0xe   : > { %s228_s26 = smul.u32 (!%p189_p10), 3, %s2800_s15  ;;  %vm301_vm0 = vcmask (!%p189_p10), 1041408   ;;  %v2810_v0 = vmov (!%p189_p10), 0   ;;  %vm273_vm1 = vcmask (!%p189_p10), 80896   ;;  %s224_s7 = sand.u32 (!%p189_p10), 1, %s2792_s13   ;;  %v2811_v11 = vmov (!%p189_p10), 0.0|0.0  }
   0xf   : > { %192 = sbr.rel (%p189_p10) target bundleno = 989 (0x3dd), region = 32  ;;  %2710 = vset.pattern.permute.xlu1 (!%p189_p10), %v2810_v0  ;;  %v303_v1 = vsel (!%p189_p10), %vm301_vm0, 1.0, %v2810_v0  ;;  %2711 = vset.pattern.permute.xlu0 (!%p189_p10), %v2810_v0  ;;  %vm2812_vm2 = vmmov (!%p189_p10), 1   ;;  %s2153_s8 = sshll.u32 (!%p189_p10), %s224_s7, 3  ;;  %v2813_v13 = vmov (!%p189_p10), 1.0|1.0   ;;  %v846_v44 = vlaneseq (!%p189_p10) }
  0x10   : > { %p233_p11 = scmp.lt.s32.totalorder (!%p189_p10), %s228_s26, 4  ;;  %2513 = vmatprep.subr.bf16.mxu0 (!%p189_p10), %v2811_v11  ;;  %vm2915_vm3 = vmpackc.low (!%p189_p10), %vm301_vm0, %vm2812_vm2  ;;  %2504 = vmatprep.subr.bf16.mxu1 (!%p189_p10), %v2811_v11  ;;  %vm2814_vm4 = vmmov (!%p189_p10), 0   ;;  %v2815_v14 = vmov (!%p189_p10), 0.0   ;;  %s2927_s9 = scalar_lea.vmem (!%p189_p10), [#allocation2], %s2153_s8  ;;  %v405_v24 = vsub.f32 (!%p189_p10), %v303_v1, %v303_v1  ;;  %v272_v53 = vld [vmem:[%s3337_s2 + $0x8] sm:$0x3] (!%p189_p10) }
  0x11   : > { %2515 = vmatpush3.bf16.msk.msra.mxu0 (!%p189_p10), %vm2915_vm3, %v2813_v13  ;;  %2313 = vmatprep.mubr.msk.f32.mxu0 (!%p189_p10), %vm2814_vm4, %v2815_v14  ;;  %264 = vst [vmem:[%s2927_s9] sm:$0xff] (!%p189_p10), %v2815_v14  ;;  %v847_v49 = vand.u32 (!%p189_p10), 127, %v846_v44  ;;  %v1420_v56 = vsel (!%p189_p10), %vm301_vm0, %v272_v53, 0  ;;  %v271_v58 = vld [vmem:[%s3337_s2] sm:$0xff] (!%p189_p10)  ;;  %p2174_p12 = scmp.ne.s32.totalorder (!%p189_p10), %s2800_s15, 1 }
  0x12   : > { %2506 = vmatpush3.bf16.msk.msra.mxu1 (!%p189_p10), %vm2915_vm3, %v2813_v13  ;;  %2274 = vmatprep.mubr.msk.f32.mxu1 (!%p189_p10), %vm2814_vm4, %v2815_v14  ;;  %v406_v25 = vand.u32 (!%p189_p10), 4294901760, %v405_v24  ;;  %v3011_v59 = vpack.c.bf16 (!%p189_p10), %v405_v24, %v2815_v14  ;;  %v1426_v61 = vand.u32 (!%p189_p10), 4294901760, %v1420_v56  ;;  %v1423_v63 = vand.u32 (!%p189_p10), 4294901760, %v271_v58 }
  0x13   : > { %2507 = vmatprep.subr.bf16.mxu1 (!%p189_p10), %v2811_v11  ;;  %2516 = vmatprep.subr.bf16.mxu0 (!%p189_p10), %v2811_v11 }
  0x14   : > { %v407_v28 = vsub.f32 (!%p189_p10), %v405_v24, %v406_v25  ;;  %v2961_v37 = vpack.c.bf16 (!%p189_p10), %v406_v25, %v2815_v14  ;;  %v3024_v1 = vsub.f32 (!%p189_p10), %v1420_v56, %v1426_v61 }
  0x16   : > { %s3351_s26 = smov (!%p233_p11, %s228_s26), 4  ;;  %v408_v35 = vand.u32 4294901760, %v407_v28  ;;  %s2002_s21 = smul.u32 (!%p2174_p12), 24, %s2800_s15  ;;  %vm2014_vm8 = vcmask (!%p2174_p12), 7168  }
  0x17   : > { %s2154_s27 = sshll.u32 %s3351_s26, 3 }
  0x18   : > { %s236_s30 = scalar_lea.vmem %s3335_s0, %s2154_s27  ;;  %s252_s6 = scalar_lea.vmem %s3336_s1, %s2154_s27  ;;  %v2976_v43 = vpack.c.bf16 %v408_v35, %v2815_v14 }
  0x19   : > { %v2897_v2 = vld [vmem:[%s236_s30] sm:$0xff]  ;;  %v2899_v3 = vld [vmem:[%s236_s30 + $0x10] sm:$0xff]  ;;  %v2901_v4 = vld [vmem:[%s236_s30 + $0x8] sm:$0xff] }
  0x1a   : > { %v274_v5 = vsel %vm273_vm1, %v2897_v2, -inf  ;;  %v280_v6 = vsel %vm273_vm1, %v2899_v3, -inf  ;;  %v277_v7 = vsel %vm273_vm1, %v2901_v4, -inf  ;;  %v268_v8 = vld [vmem:[%s252_s6] sm:$0xff]  ;;  %v270_v9 = vld [vmem:[%s252_s6 + $0x10] sm:$0xff]  ;;  %v269_v10 = vld [vmem:[%s252_s6 + $0x8] sm:$0xff] }
  0x1b   : > { %275 = vmax.xlane.f32.xlu0 %v274_v5  ;;  %281 = vmax.xlane.f32.xlu1 %v280_v6  ;;  %v3029_v5 = vsub.f32 %v271_v58, %v1423_v63 }
  0x1d   : > { %v2547_v56 = vpack.c.bf16 %v3024_v1, %v3029_v5 }
  0x1f   : > { %278 = vmax.xlane.f32.xlu0 %v277_v7 }
  0x2c   : > { %849 = vperm.xlu1 %2710, %v268_v8  }
  0x30   : > { %855 = vperm.xlu1 %2710, %v270_v9  }
  0x35   : > { %852 = vperm.xlu0 %2711, %v269_v10   ;;  %v1522_v10 = vand.u32 4294901760, %v3029_v5 }
  0xa8   : > { %v2938_v15 = vpop.xlane.xlu0 %275  ;;  %v2940_v16 = vpop.xlane.xlu1 %281 }
  0xa9   : > { %v283_v17 = vsub.f32 %v2897_v2, %v2938_v15  ;;  %v285_v18 = vsub.f32 %v2899_v3, %v2940_v16 }
  0xab   : > { %v286_v19 = vmul.f32 1.442695, %v283_v17  ;;  %v290_v20 = vmul.f32 1.442695, %v285_v18  ;;  %v1529_v17 = vand.u32 4294901760, %v3024_v1  ;;  %v3054_v18 = vpack.c.bf16 %v1426_v61, %v1423_v63 }
  0xac   : > { %v2946_v21 = vpop.xlane.xlu0 %278  ;;  %v850_v52 = vpop.permute.xlu1 %849 }
  0xad   : > { %2712 = vpow2.f32 %v286_v19  ;;  %v284_v22 = vsub.f32 %v2901_v4, %v2946_v21  ;;  %vm857_vm5 = vcmp.eq.s32.totalorder %v847_v49, %v850_v52  ;;  %v1530_v24 = vsub.f32 %v3024_v1, %v1529_v17 }
  0xae   : > { %2714 = vpow2.f32 %v290_v20  ;;  %v3001_v57 = vsel %vm857_vm5, 1.0, %v2815_v14  ;;  %v2553_v58 = vpack.c.bf16 %v1529_v17, %v1522_v10 }
  0xaf   : > { %v288_v23 = vmul.f32 1.442695, %v284_v22  ;;  %v866_v62 = vmul.f32 %v3001_v57, %v2897_v2  ;;  %v1411_v2 = vsel %vm273_vm1, %v3001_v57, 0  ;;  %v1531_v35 = vand.u32 4294901760, %v1530_v24 }
  0xb0   : > { %v856_v60 = vpop.permute.xlu1 %855  ;;  %v3044_v9 = vsub.f32 %v1411_v2, %v1411_v2 }
  0xb1   : > { %2716 = vpow2.f32 %v288_v23  ;;  %vm859_vm7 = vcmp.eq.s32.totalorder %v847_v49, %v856_v60  ;;  %v870_v6 = vsel %vm273_vm1, %v866_v62, 0 }
  0xb2   : > { %v3040_v8 = vsel %vm859_vm7, 1.0, %v2815_v14  ;;  %v1491_v23 = vand.u32 4294901760, %v3044_v9 }
  0xb3   : > { %v868_v19 = vmul.f32 %v3040_v8, %v2899_v3  ;;  %v1523_v3 = vsub.f32 %v3029_v5, %v1522_v10 }
  0xb4   : > { %v853_v55 = vpop.permute.xlu0 %852 }
  0xb5   : > { %vm858_vm6 = vcmp.eq.s32.totalorder %v847_v49, %v853_v55 }
  0xb6   : > { %v3022_v0 = vsel %vm858_vm6, 1.0, %v2815_v14 }
  0xb7   : > { %v2713_v26 = vpop.eup %2712  ;;  %v867_v7 = vmul.f32 %v3022_v0, %v2901_v4  ;;  %v3052_v4 = vand.u32 4294901760, %v870_v6  ;;  %v1414_v22 = vsel %vm273_vm1, %v3022_v0, 0 }
  0xb8   : > { %v2715_v27 = vpop.eup %2714  ;;  %v293_v29 = vsel %vm273_vm1, %v2713_v26, 0  ;;  %v1417_v26 = vsel %vm273_vm1, %v3040_v8, 0  ;;  %v3081_v28 = vsub.f32 %v1414_v22, %v1414_v22 }
  0xb9   : > { %v2951_v30 = vand.u32 4294901760, %v293_v29  ;;  %v299_v31 = vsel %vm273_vm1, %v2715_v27, 0  ;;  %v873_v20 = vsel %vm273_vm1, %v867_v7, 0  ;;  %v3075_v25 = vsub.f32 %v870_v6, %v3052_v4 }
  0xba   : > { %v2954_v32 = vand.u32 4294901760, %v299_v31  ;;  %v3079_v27 = vand.u32 4294901760, %v873_v20 }
  0xbb   : > { %v2717_v33 = vpop.eup %2716  ;;  %v2957_v34 = vsub.f32 %v293_v29, %v2951_v30  ;;  %v876_v29 = vsel %vm273_vm1, %v868_v19, 0 }
  0xbc   : > { %v296_v36 = vsel %vm273_vm1, %v2717_v33, 0  ;;  %v2967_v40 = vsub.f32 %v299_v31, %v2954_v32  ;;  %v1492_v31 = vsub.f32 %v3044_v9, %v1491_v23  ;;  %v1524_v33 = vand.u32 4294901760, %v1523_v3 }
  0xbd   : > { %v373_v38 = vand.u32 4294901760, %v2957_v34  ;;  %v2964_v39 = vand.u32 4294901760, %v296_v36 }
  0xbe   : > { %v393_v47 = vand.u32 4294901760, %v2967_v40 }
  0xbf   : > { %2314 = vmatmul.mubr.f32.vlgmr.msra.gmra.mrb[0].mxu0 %v373_v38  ;;  %v374_v41 = vsub.f32 %v2957_v34, %v373_v38  ;;  %v2971_v42 = vsub.f32 %v296_v36, %v2964_v39  ;;  %v3098_v36 = vand.u32 4294901760, %v876_v29  ;;  %v1501_v38 = vand.u32 4294901760, %v3081_v28 }
  0xc0   : > { %2316 = vmatprep.mubr.msk.f32.mxu0 %vm2814_vm4, %v2815_v14  ;;  %2518 = vmatpush3.bf16.msra.mxu0 %v2961_v37  ;;  %v394_v51 = vsub.f32 %v2967_v40, %v393_v47 }
  0xc1   : > { %v375_v45 = vand.u32 4294901760, %v374_v41  ;;  %v383_v46 = vand.u32 4294901760, %v2971_v42  ;;  %2519 = vmatprep.subr.bf16.mxu0 %v2811_v11  ;;  %v1493_v41 = vand.u32 4294901760, %v1492_v31 }
  0xc2   : > { %v395_v54 = vand.u32 4294901760, %v394_v51 }
  0xc3   : > { %2275 = vmatmul.mubr.f32.vlgmr.msra.gmra.mrb[0].mxu1 %v375_v45  ;;  %2317 = vmatmul.mubr.f32.gmra.mrb[2].mxu0 %v383_v46  ;;  %v384_v48 = vsub.f32 %v2971_v42, %v383_v46  ;;  %v2544_v45 = vpack.c.bf16 %v1531_v35, %v1524_v33 }
  0xc4   : > { %2509 = vmatpush3.bf16.msra.mxu1 %v2976_v43  ;;  %2277 = vmatprep.mubr.msk.f32.mxu1 %vm2814_vm4, %v2815_v14 }
  0xc5   : > { %2319 = vmatprep.mubr.msk.f32.mxu0 %vm2814_vm4, %v2815_v14  ;;  %v385_v50 = vand.u32 4294901760, %v384_v48  ;;  %2510 = vmatprep.subr.bf16.mxu1 %v2811_v11  ;;  %v3123_v48 = vsub.f32 %v876_v29, %v3098_v36 }
  0xc7   : > { %2278 = vmatmul.mubr.f32.gmra.mrb[2].mxu1 %v385_v50  ;;  %2320 = vmatmul.mubr.f32.gmra.mrb[4].mxu0 %v393_v47 }
  0xc8   : > { %2280 = vmatprep.mubr.msk.f32.mxu1 %vm2814_vm4, %v2815_v14  ;;  %2326 = vmatprep.mubr.msk.f32.mxu0 %vm2814_vm4, %v2815_v14 }
  0xcb   : > { %2281 = vmatmul.mubr.f32.gmra.mrb[4].mxu1 %v395_v54  ;;  %2327 = vmatmul.mubr.f32.vlgmr.msra.gmra.mrb[0].mxu0 %v2951_v30 }
  0xcc   : > { %2287 = vmatprep.mubr.msk.f32.mxu1 %vm2814_vm4, %v2815_v14  ;;  %2329 = vmatprep.mubr.msk.f32.mxu0 %vm2814_vm4, %v2815_v14 }
  0xcd   : > { %2521 = vmatpush3.bf16.msk.msra.mxu0 %vm2915_vm3, %v2813_v13 }
  0xce   : > { %2540 = vmatprep.subr.bf16.mxu0 %v2811_v11 }
  0xcf   : > { %2288 = vmatmul.mubr.f32.vlgmr.msra.gmra.mrb[0].mxu1 %v2951_v30  ;;  %2330 = vmatmul.mubr.f32.gmra.mrb[2].mxu0 %v2964_v39 }
  0xd0   : > { %2512 = vmatpush3.bf16.msra.mxu1 %v3011_v59  ;;  %2290 = vmatprep.mubr.msk.f32.mxu1 %vm2814_vm4, %v2815_v14 }
  0xd1   : > { %2332 = vmatprep.mubr.msk.f32.mxu0 %vm2814_vm4, %v2815_v14  ;;  %2522 = vmatprep.subr.bf16.mxu1 %v2811_v11 }
  0xd3   : > { %2291 = vmatmul.mubr.f32.gmra.mrb[2].mxu1 %v2964_v39  ;;  %2333 = vmatmul.mubr.f32.gmra.mrb[4].mxu0 %v2954_v32 }
  0xd4   : > { %2293 = vmatprep.mubr.msk.f32.mxu1 %vm2814_vm4, %v2815_v14  ;;  %2339 = vmatprep.mubr.msk.f32.mxu0 %vm2814_vm4, %v2815_v14 }
  0xd7   : > { %2294 = vmatmul.mubr.f32.gmra.mrb[4].mxu1 %v2954_v32  ;;  %2340 = vmatmul.mubr.f32.vlgmr.msra.gmra.mrb[0].mxu0 %v2951_v30  ;;  %v3088_v30 = vsub.f32 %v1417_v26, %v1417_v26 }
  0xd8   : > { %2300 = vmatprep.mubr.msk.f32.mxu1 %vm2814_vm4, %v2815_v14  ;;  %2342 = vmatprep.mubr.msk.f32.mxu0 %vm2814_vm4, %v2815_v14 }
  0xd9   : > { %2542 = vmatpush3.bf16.msra.mxu0 %v3054_v18  ;;  %v1511_v46 = vand.u32 4294901760, %v3088_v30 }
  0xda   : > { %2543 = vmatprep.subr.bf16.mxu0 %v2811_v11 }
  0xdb   : > { %2301 = vmatmul.mubr.f32.vlgmr.msra.gmra.mrb[0].mxu1 %v2957_v34  ;;  %2343 = vmatmul.mubr.f32.gmra.mrb[2].mxu0 %v2964_v39  ;;  %v946_v34 = vand.u32 4294901760, %v3075_v25  ;;  %v3106_v39 = vsub.f32 %v873_v20, %v3079_v27  ;;  %v1512_v49 = vsub.f32 %v3088_v30, %v1511_v46 }
  0xdc   : > { %2524 = vmatpush3.bf16.msk.msra.mxu1 %vm2915_vm3, %v2813_v13  ;;  %2303 = vmatprep.mubr.msk.f32.mxu1 %vm2814_vm4, %v2815_v14 }
  0xdd   : > { %2345 = vmatprep.mubr.msk.f32.mxu0 %vm2814_vm4, %v2815_v14  ;;  %2525 = vmatprep.subr.bf16.mxu1 %v2811_v11  ;;  %v947_v47 = vsub.f32 %v3075_v25, %v946_v34  ;;  %v1513_v54 = vand.u32 4294901760, %v1512_v49 }
  0xdf   : > { %2304 = vmatmul.mubr.f32.gmra.mrb[2].mxu1 %v2971_v42  ;;  %2346 = vmatmul.mubr.f32.gmra.mrb[4].mxu0 %v2954_v32  ;;  %v1502_v42 = vsub.f32 %v3081_v28, %v1501_v38  ;;  %v956_v32 = vand.u32 4294901760, %v3106_v39  ;;  %v948_v50 = vand.u32 4294901760, %v947_v47 }
  0xe0   : > { %2306 = vmatprep.mubr.msk.f32.mxu1 %vm2814_vm4, %v2815_v14  ;;  %2430 = vmatprep.mubr.msk.f32.mxu0 %vm2814_vm4, %v2815_v14 }
  0xe1   : > { %v1503_v51 = vand.u32 4294901760, %v1502_v42  ;;  %v957_v52 = vsub.f32 %v3106_v39, %v956_v32 }
  0xe3   : > { %2307 = vmatmul.mubr.f32.gmra.mrb[4].mxu1 %v2967_v40  ;;  %2431 = vmatmul.mubr.f32.vlgmr.msra.gmra.mrb[6].mxu0 %v1493_v41  ;;  %v966_v40 = vand.u32 4294901760, %v3123_v48  ;;  %v958_v53 = vand.u32 4294901760, %v957_v52 }
  0xe4   : > { %2352 = vmatprep.mubr.msk.f32.mxu1 %vm2814_vm4, %v2815_v14  ;;  %2433 = vmatprep.mubr.msk.f32.mxu0 %vm2814_vm4, %v2815_v14 }
  0xe5   : > { %2545 = vmatpush3.bf16.msra.mxu0 %v2544_v45  ;;  %v967_v55 = vsub.f32 %v3123_v48, %v966_v40 }
  0xe6   : > { %2546 = vmatprep.subr.bf16.mxu0 %v2811_v11 }
  0xe7   : > { %2353 = vmatmul.mubr.f32.vlgmr.msra.gmra.mrb[6].mxu1 %v948_v50  ;;  %2434 = vmatmul.mubr.f32.gmra.mrb[8].mxu0 %v1503_v51 }
  0xe8   : > { %2527 = vmatpush3.bf16.msra.mxu1 %v2976_v43  ;;  %2355 = vmatprep.mubr.msk.f32.mxu1 %vm2814_vm4, %v2815_v14  ;;  %v968_v43 = vand.u32 4294901760, %v967_v55 }
  0xe9   : > { %2436 = vmatprep.mubr.msk.f32.mxu0 %vm2814_vm4, %v2815_v14  ;;  %2528 = vmatprep.subr.bf16.mxu1 %v2811_v11 }
  0xeb   : > { %2356 = vmatmul.mubr.f32.gmra.mrb[8].mxu1 %v958_v53  ;;  %2437 = vmatmul.mubr.f32.gmra.mrb[10].mxu0 %v1513_v54 }
  0xec   : > { %2358 = vmatprep.mubr.msk.f32.mxu1 %vm2814_vm4, %v2815_v14  ;;  %2443 = vmatprep.mubr.msk.f32.mxu0 %vm2814_vm4, %v2815_v14 }
  0xef   : > { %2359 = vmatmul.mubr.f32.gmra.mrb[10].mxu1 %v968_v43  ;;  %2444 = vmatmul.mubr.msk.f32.vlgmr.msra.gmra.mrb[6].mxu0 %vm273_vm1, %v3001_v57 }
  0xf0   : > { %2365 = vmatprep.mubr.msk.f32.mxu1 %vm2814_vm4, %v2815_v14  ;;  %2446 = vmatprep.mubr.msk.f32.mxu0 %vm2814_vm4, %v2815_v14 }
  0xf1   : > { %2548 = vmatpush3.bf16.msra.mxu0 %v2547_v56 }
  0xf2   : > { %2549 = vmatprep.subr.bf16.mxu0 %v2811_v11 }
  0xf3   : > { %2366 = vmatmul.mubr.f32.vlgmr.msra.gmra.mrb[6].mxu1 %v3052_v4  ;;  %2447 = vmatmul.mubr.msk.f32.gmra.mrb[8].mxu0 %vm273_vm1, %v3022_v0 }
  0xf4   : > { %2530 = vmatpush3.bf16.msra.mxu1 %v3011_v59  ;;  %2368 = vmatprep.mubr.msk.f32.mxu1 %vm2814_vm4, %v2815_v14 }
  0xf5   : > { %2449 = vmatprep.mubr.msk.f32.mxu0 %vm2814_vm4, %v2815_v14  ;;  %2531 = vmatprep.subr.bf16.mxu1 %v2811_v11 }
  0xf7   : > { %2369 = vmatmul.mubr.f32.gmra.mrb[8].mxu1 %v3079_v27  ;;  %2450 = vmatmul.mubr.msk.f32.gmra.mrb[10].mxu0 %vm273_vm1, %v3040_v8 }
  0xf8   : > { %2371 = vmatprep.mubr.msk.f32.mxu1 %vm2814_vm4, %v2815_v14  ;;  %2456 = vmatprep.mubr.msk.f32.mxu0 %vm2814_vm4, %v2815_v14 }
  0xfb   : > { %2372 = vmatmul.mubr.f32.gmra.mrb[10].mxu1 %v3098_v36  ;;  %2457 = vmatmul.mubr.f32.vlgmr.msra.gmra.mrb[6].mxu0 %v3044_v9 }
  0xfc   : > { %2378 = vmatprep.mubr.msk.f32.mxu1 %vm2814_vm4, %v2815_v14  ;;  %2459 = vmatprep.mubr.msk.f32.mxu0 %vm2814_vm4, %v2815_v14 }
  0xfd   : > { %2551 = vmatpush3.bf16.msra.mxu0 %v3054_v18 }
  0xfe   : > { %2552 = vmatprep.subr.bf16.mxu0 %v2811_v11 }
  0xff   : > { %2379 = vmatmul.mubr.f32.vlgmr.msra.gmra.mrb[6].mxu1 %v3075_v25  ;;  %2460 = vmatmul.mubr.f32.gmra.mrb[8].mxu0 %v3081_v28 }
 0x100   : > { %2533 = vmatpush3.bf16.msk.msra.mxu1 %vm2915_vm3, %v2813_v13  ;;  %2381 = vmatprep.mubr.msk.f32.mxu1 %vm2814_vm4, %v2815_v14 }
 0x101   : > { %2462 = vmatprep.mubr.msk.f32.mxu0 %vm2814_vm4, %v2815_v14  ;;  %2534 = vmatprep.subr.bf16.mxu1 %v2811_v11 }
 0x103   : > { %2382 = vmatmul.mubr.f32.gmra.mrb[8].mxu1 %v3106_v39  ;;  %2463 = vmatmul.mubr.f32.gmra.mrb[10].mxu0 %v3088_v30 }
 0x104   : > { %2384 = vmatprep.mubr.msk.f32.mxu1 %vm2814_vm4, %v2815_v14  ;;  %2469 = vmatprep.mubr.msk.f32.mxu0 %vm2814_vm4, %v2815_v14 }
 0x107   : > { %2385 = vmatmul.mubr.f32.gmra.mrb[10].mxu1 %v3123_v48  ;;  %2470 = vmatmul.mubr.f32.vlgmr.msra.gmra.mrb[6].mxu0 %v1491_v23 }
 0x108   : > { %2391 = vmatprep.mubr.msk.f32.mxu1 %vm2814_vm4, %v2815_v14  ;;  %2472 = vmatprep.mubr.msk.f32.mxu0 %vm2814_vm4, %v2815_v14 }
 0x109   : > { %2554 = vmatpush3.bf16.msra.mxu0 %v2553_v58 }
 0x10a   : > { %2555 = vmatprep.subr.bf16.mxu0 %v2811_v11 }
 0x10b   : > { %2392 = vmatmul.mubr.f32.vlgmr.msra.gmra.mrb[6].mxu1 %v946_v34  ;;  %2473 = vmatmul.mubr.f32.gmra.mrb[8].mxu0 %v1501_v38 }
 0x10c   : > { %2536 = vmatpush3.bf16.msra.mxu1 %v2961_v37  ;;  %2394 = vmatprep.mubr.msk.f32.mxu1 %vm2814_vm4, %v2815_v14 }
 0x10d   : > { %2475 = vmatprep.mubr.msk.f32.mxu0 %vm2814_vm4, %v2815_v14  ;;  %2537 = vmatprep.subr.bf16.mxu1 %v2811_v11 }
 0x10f   : > { %2395 = vmatmul.mubr.f32.gmra.mrb[8].mxu1 %v956_v32  ;;  %2476 = vmatmul.mubr.f32.gmra.mrb[10].mxu0 %v1511_v46 }
 0x110   : > { %2397 = vmatprep.mubr.msk.f32.mxu1 %vm2814_vm4, %v2815_v14  ;;  %2482 = vmatprep.mubr.msk.f32.mxu0 %vm2814_vm4, %v2815_v14 }
 0x113   : > { %2398 = vmatmul.mubr.f32.gmra.mrb[10].mxu1 %v966_v40  ;;  %2483 = vmatmul.mubr.msk.f32.vlgmr.msra.gmra.mrb[6].mxu0 %vm273_vm1, %v3001_v57 }
 0x114   : > { %2404 = vmatprep.mubr.msk.f32.mxu1 %vm2814_vm4, %v2815_v14  ;;  %2485 = vmatprep.mubr.msk.f32.mxu0 %vm2814_vm4, %v2815_v14 }
 0x115   : > { %2557 = vmatpush3.bf16.msra.mxu0 %v3054_v18 }
 0x117   : > { %2405 = vmatmul.mubr.f32.vlgmr.msra.gmra.mrb[6].mxu1 %v3052_v4  ;;  %2486 = vmatmul.mubr.msk.f32.gmra.mrb[8].mxu0 %vm273_vm1, %v3022_v0 }
 0x118   : > { %2539 = vmatpush3.bf16.msk.msra.mxu1 %vm2915_vm3, %v2813_v13  ;;  %2407 = vmatprep.mubr.msk.f32.mxu1 %vm2814_vm4, %v2815_v14 }
 0x119   : > { %2488 = vmatprep.mubr.msk.f32.mxu0 %vm2814_vm4, %v2815_v14 }
 0x11b   : > { %2408 = vmatmul.mubr.f32.gmra.mrb[8].mxu1 %v3079_v27  ;;  %2489 = vmatmul.mubr.msk.f32.gmra.mrb[10].mxu0 %vm273_vm1, %v3040_v8 }
 0x11c   : > { %2410 = vmatprep.mubr.msk.f32.mxu1 %vm2814_vm4, %v2815_v14  ;;  %2495 = vmatprep.mubr.msk.f32.mxu0 %vm2814_vm4, %v2815_v14 }
 0x11f   : > { %2411 = vmatmul.mubr.f32.gmra.mrb[10].mxu1 %v3098_v36  ;;  %2496 = vmatmul.mubr.msk.f32.vlgmr.msra.gmra.mrb[6].mxu0 %vm273_vm1, %v3001_v57 }
 0x120   : > { %2417 = vmatprep.mubr.msk.f32.mxu1 %vm2814_vm4, %v2815_v14  ;;  %2498 = vmatprep.mubr.msk.f32.mxu0 %vm2814_vm4, %v2815_v14 }
 0x123   : > { %2418 = vmatmul.mubr.f32.vlgmr.msra.gmra.mrb[6].mxu1 %v3052_v4  ;;  %2499 = vmatmul.mubr.msk.f32.gmra.mrb[8].mxu0 %vm273_vm1, %v3022_v0 }
 0x124   : > { %2420 = vmatprep.mubr.msk.f32.mxu1 %vm2814_vm4, %v2815_v14  ;;  %2501 = vmatprep.mubr.msk.f32.mxu0 %vm2814_vm4, %v2815_v14 }
 0x127   : > { %2421 = vmatmul.mubr.f32.gmra.mrb[8].mxu1 %v3079_v27  ;;  %2502 = vmatmul.mubr.msk.f32.gmra.mrb[10].mxu0 %vm273_vm1, %v3040_v8 }
 0x128   : > { %2423 = vmatprep.mubr.msk.f32.mxu1 %vm2814_vm4, %v2815_v14 }
 0x12b   : > { %2424 = vmatmul.mubr.f32.gmra.mrb[10].mxu1 %v3098_v36 }
 0x1aa   : > { %v821_v11 = vpop.f32.mrb[0].mxu0 }
 0x1ab   : > { %v2341_v12 = vpop.f32.mrb[1].mxu0 }
 0x1ae   : > { %v559_v13 = vpop.f32.mrb[0].mxu1  ;;  %v827_v37 = vpop.f32.mrb[2].mxu0 }
 0x1af   : > { %v2558_v57 = vadd.f32 %v821_v11, %v559_v13  ;;  %v2302_v59 = vpop.f32.mrb[1].mxu1  ;;  %v2344_v60 = vpop.f32.mrb[3].mxu0  ;;  %v1999_v11 = vshrl.u32 (!%p2174_p12), %v846_v44, 7 }
 0x1b1   : > { %2718 = vlog2.f32 %v2558_v57  ;;  %v2000_v12 = vadd.s32 (!%p2174_p12), 8, %v1999_v11  ;;  %v2001_v13 = vadd.s32 (!%p2174_p12), 16, %v1999_v11 }
 0x1b2   : > { %v566_v61 = vpop.f32.mrb[2].mxu1  ;;  %v833_v62 = vpop.f32.mrb[4].mxu0 }
 0x1b3   : > { %v2559_v63 = vadd.f32 %v827_v37, %v566_v61  ;;  %v2305_v0 = vpop.f32.mrb[3].mxu1  ;;  %v2347_v1 = vpop.f32.mrb[5].mxu0  ;;  %v2003_v37 = vstv (!%p2174_p12), %s2002_s21 }
 0x1b4   : > { %v2004_v57 = vadd.s32 (!%p2174_p12), %v2003_v37, %v1999_v11  ;;  %v2005_v59 = vadd.s32 (!%p2174_p12), %v2003_v37, %v2000_v12  ;;  %v2006_v60 = vadd.s32 (!%p2174_p12), %v2003_v37, %v2001_v13 }
 0x1b5   : > { %2720 = vlog2.f32 %v2559_v63 }
 0x1b6   : > { %v573_v5 = vpop.f32.mrb[4].mxu1  ;;  %vm2008_vm9 = vcmp.lt.s32.totalorder (!%p2174_p12), %v2004_v57, 37  ;;  %vm2009_vm10 = vcmp.lt.s32.totalorder (!%p2174_p12), %v2005_v59, 37  ;;  %vm2010_vm11 = vcmp.lt.s32.totalorder (!%p2174_p12), %v2006_v60, 37 }
 0x1b7   : > { %v2560_v2 = vadd.f32 %v833_v62, %v573_v5  ;;  %v2308_v6 = vpop.f32.mrb[5].mxu1 }
 0x1b9   : > { %2722 = vlog2.f32 %v2560_v2 }
 0x1bb   : > { %v2719_v14 = vpop.eup %2718 }
 0x1bc   : > { %v838_v7 = vmul.f32 0.6931472, %v2719_v14 }
 0x1be   : > { %v843_v4 = vadd.f32 %v838_v7, %v2938_v15 }
 0x1bf   : > { %v2721_v8 = vpop.eup %2720 }
 0x1c0   : > { %v840_v17 = vmul.f32 0.6931472, %v2721_v8 }
 0x1c2   : > { %v844_v26 = vadd.f32 %v840_v17, %v2946_v21 }
 0x1c3   : > { %v2723_v18 = vpop.eup %2722 }
 0x1c4   : > { %v842_v24 = vmul.f32 0.6931472, %v2723_v18 }
 0x1c6   : > { %v845_v15 = vadd.f32 %v842_v24, %v2940_v16 }
 0x1f2   : > { %v1951_v9 = vpop.f32.mrb[6].mxu0 }
 0x1f3   : > { %v2497_v10 = vpop.f32.mrb[7].mxu0 }
 0x1f6   : > { %v1394_v19 = vpop.f32.mrb[6].mxu1  ;;  %v1957_v20 = vpop.f32.mrb[8].mxu0 }
 0x1f7   : > { %v1967_v22 = vsub.f32 %v843_v4, %v1394_v19  ;;  %v2419_v23 = vpop.f32.mrb[7].mxu1  ;;  %v2500_v3 = vpop.f32.mrb[9].mxu0  ;;  %v2007_v4 = vld [vmem:[%s2927_s9] sm:$0xff] (!%p2174_p12) }
 0x1f9   : > { %v1970_v25 = vmul.f32 %v1967_v22, %v1951_v9 }
 0x1fa   : > { %v1400_v27 = vpop.f32.mrb[8].mxu1  ;;  %v1963_v28 = vpop.f32.mrb[10].mxu0 }
 0x1fb   : > { %v1973_v29 = vsub.f32 0.0, %v1970_v25  ;;  %v1968_v30 = vsub.f32 %v844_v26, %v1400_v27  ;;  %v2422_v31 = vpop.f32.mrb[9].mxu1  ;;  %v2503_v33 = vpop.f32.mrb[11].mxu0 }
 0x1fd   : > { %v1976_v35 = vmul.f32 1.442695, %v1973_v29  ;;  %v1971_v36 = vmul.f32 %v1968_v30, %v1957_v20 }
 0x1fe   : > { %v1406_v34 = vpop.f32.mrb[10].mxu1 }
 0x1ff   : > { %2724 = vpow2.f32 %v1976_v35  ;;  %v1974_v38 = vsub.f32 0.0, %v1971_v36  ;;  %v1969_v39 = vsub.f32 %v845_v15, %v1406_v34  ;;  %v2425_v41 = vpop.f32.mrb[11].mxu1 }
 0x201   : > { %v1978_v45 = vmul.f32 1.442695, %v1974_v38  ;;  %v1972_v46 = vmul.f32 %v1969_v39, %v1963_v28 }
 0x203   : > { %2726 = vpow2.f32 %v1978_v45  ;;  %v1975_v47 = vsub.f32 0.0, %v1972_v46 }
 0x205   : > { %v1980_v21 = vmul.f32 1.442695, %v1975_v47 }
 0x207   : > { %2728 = vpow2.f32 %v1980_v21 }
 0x209   : > { %v2725_v42 = vpop.eup %2724 }
 0x20a   : > { %v1982_v32 = vsub.f32 1.0, %v2725_v42 }
 0x20c   : > { %v1985_v48 = vmax.f32 %v1982_v32, 0.0 }
 0x20d   : > { %v2727_v49 = vpop.eup %2726 }
 0x20e   : > { %v1988_v50 = vmul.f32 %v1985_v48, %v1985_v48  ;;  %v1983_v51 = vsub.f32 1.0, %v2727_v49 }
 0x210   : > { %v1991_v52 = vmul.f32 %v1988_v50, %v1970_v25  ;;  %v1986_v40 = vmax.f32 %v1983_v51, 0.0 }
 0x211   : > { %v2729_v16 = vpop.eup %2728 }
 0x212   : > { %v1989_v53 = vmul.f32 %v1986_v40, %v1986_v40  ;;  %v1984_v54 = vsub.f32 1.0, %v2729_v16  ;;  %1997 = sbr.rel (%p2174_p12) target bundleno = 750 (0x2ee), region = 40  ;;  %v2011_v61 = vsel (!%p2174_p12), %vm2008_vm9, %v1991_v52, 0.0 }
 0x213   : > { %v2015_v0 = vsel (!%p2174_p12), %vm2014_vm8, %v2011_v61, 0.0 }
 0x214   : > { %v1992_v55 = vmul.f32 %v1989_v53, %v1971_v36  ;;  %v1987_v43 = vmax.f32 %v1984_v54, 0.0 }
 0x216   : > { %v1990_v56 = vmul.f32 %v1987_v43, %v1987_v43  ;;  %v2012_v62 = vsel (!%p2174_p12), %vm2009_vm10, %v1992_v55, 0.0 }
 0x217   : > { %v2016_v1 = vsel (!%p2174_p12), %vm2014_vm8, %v2012_v62, 0.0 }
 0x218   : > { %v1993_v58 = vmul.f32 %v1990_v56, %v1972_v46  ;;  %v2017_v44 = vadd.f32 (!%p2174_p12), %v2016_v1, %v2015_v0 }
 0x21a   : > { %v2013_v63 = vsel %vm2010_vm11, %v1993_v58, 0.0 }
 0x21b   : > { %v2018_v5 = vsel %vm2014_vm8, %v2013_v63, 0.0 }
 0x21c   : > { %v2019_v2 = vadd.f32 %v2018_v5, %v2017_v44 }
 0x21e   : > { %2020 = vadd.xlane.f32.xlu0 %v2019_v2 }
 0x2ab   : > { %v2021_v6 = vpop.xlane.xlu0 %2020 }
 0x2ac   : > { %v2022_v14 = vrot.slane %v2021_v6, 4 }
 0x2ae   : > { %v2023_v7 = vadd.f32 %v2022_v14, %v2021_v6 }
 0x2b0   : > { %v2024_v8 = vrot.slane %v2023_v7, 2 }
 0x2b2   : > { %v2025_v9 = vadd.f32 %v2024_v8, %v2023_v7 }
 0x2b4   : > { %v2026_v10 = vrot.slane %v2025_v9, 1 }
 0x2b6   : > { %v2027_v17 = vadd.f32 %v2026_v10, %v2025_v9 }
 0x2b8   : > { %2645 = vpush %v2027_v17 }
 0x2e9   : > { %s2646_s23 = spop %2645 }
 0x2ea   : > { %v2029_v18 = vstv %s2646_s23 }
 0x2eb   : > { %v2030_v19 = vadd.f32 %v2029_v18, %v2007_v4 }
 0x2ed   : > { %2031 = vst [vmem:[%s2927_s9] sm:$0xff] %v2030_v19 }
 0x2ee PF: > { %p2175_p13 = scmp.eq.s32.totalorder %s2800_s15, 1 }
 0x2ef   : > { %vm2037_vm12 = vcmask (!%p2175_p13), 7168  }
 0x2f0   : > { %2035 = sbr.rel (%p2175_p13) target bundleno = 965 (0x3c5), region = 44  ;;  %v2038_v20 = vsel (!%p2175_p13), %vm2037_vm12, %v1991_v52, 0.0  ;;  %v2039_v22 = vsel (!%p2175_p13), %vm2037_vm12, %v1992_v55, 0.0  ;;  %v2041_v23 = vsel (!%p2175_p13), %vm2037_vm12, %v1993_v58, 0.0 }
 0x2f1   : > { %v2040_v3 = vadd.f32 (!%p2175_p13), %v2039_v22, %v2038_v20 }
 0x2f3   : > { %v2042_v24 = vadd.f32 (!%p2175_p13), %v2041_v23, %v2040_v3 }
 0x2f4   : > { %v2036_v33 = vld [vmem:[%s2927_s9] sm:$0xff] (!%p2175_p13) }
 0x2f5   : > { %2043 = vadd.xlane.f32.xlu0 (!%p2175_p13), %v2042_v24 }
 0x382   : > { %v2044_v25 = vpop.xlane.xlu0 %2043 }
 0x383   : > { %v2045_v26 = vrot.slane %v2044_v25, 4 }
 0x385   : > { %v2046_v27 = vadd.f32 %v2045_v26, %v2044_v25 }
 0x387   : > { %v2047_v28 = vrot.slane %v2046_v27, 2 }
 0x389   : > { %v2048_v29 = vadd.f32 %v2047_v28, %v2046_v27 }
 0x38b   : > { %v2049_v30 = vrot.slane %v2048_v29, 1 }
 0x38d   : > { %v2050_v31 = vadd.f32 %v2049_v30, %v2048_v29 }
 0x38f   : > { %2647 = vpush %v2050_v31 }
 0x3c0   : > { %s2648_s26 = spop %2647 }
 0x3c1   : > { %v2052_v35 = vstv %s2648_s26 }
 0x3c2   : > { %v2053_v36 = vadd.f32 %v2052_v35, %v2036_v33 }
 0x3c4   : > { %2054 = vst [vmem:[%s2927_s9] sm:$0xff] %v2053_v36 }
 0x3c5 PF: > { %s2177_s27 = sshll.u32 %s2800_s15, 7  ;;  %s2069_s4 = sshll.u32 %s2927_s9, 4  ;;  %s2070_s4 = int_to_ptr.vmem [resolvable:$true] %s2069_s4 }
 0x3c6   : > { %s3291_s30 = scalar_lea.hbm %s3338_s3, %s2177_s27  ;;  %s2056_s5 = scalar_lea.sflag [#allocation3], %s224_s7 }
 0x3c7   : > { %s2730_s6 = scalar_lea.vmem %s2070_s4, 128  ;;  %s2816_s8 = smov [#allocation2]  }
 0x3c8   : > { %p2731_p0 = scmp.ne.s32.totalorder %s2070_s4, %s2730_s6  ;;  %s2734_s10 = sshll.u32 %s2816_s8, 4  ;;  %s2735_s10 = int_to_ptr.vmem [resolvable:$false] %s2734_s10 }
 0x3c9   : > { %s2736_s11 = scalar_lea.vmem %s2735_s10, 256  ;;  %p2737_p3 = scmp.lt.s32.totalorder %s2070_s4, %s2735_s10 }
 0x3ca   : > { %p2732_p1 = pnand %p2731_p0, %p2877_p4  ;;  %p2738_p5 = scmp.lt.s32.totalorder %s2736_s11, %s2730_s6 }
 0x3cc   : > { %p2733_p2 = pneg %p2732_p1  ;;  %p2739_p6 = por %p2738_p5, %p2737_p3 }
 0x3ce   : > { %p2740_p7 = pnand %p2739_p6, %p2733_p2 }
 0x3d0   : > { %2743 = shalt.err (!%p2740_p7)
}
 0x3d1   : > { %s2744_s15 = scalar_lea.hbm %s3291_s30, 128  ;;  %s2748_s18 = scalar_lea.hbm %s3338_s3, 256 }
 0x3d2   : > { %p2745_p9 = scmp.ne.s32.totalorder %s3291_s30, %s2744_s15  ;;  %p2749_p12 = scmp.lt.u32.totalorder %s3291_s30, %s3338_s3 }
 0x3d3   : > { %p2750_p13 = scmp.lt.u32.totalorder %s2748_s18, %s2744_s15  ;;  %p2752_p1 = scmp.lt.u32.totalorder %s2744_s15, %s3291_s30 }
 0x3d4   : > { %p2746_p10 = pnand %p2745_p9, %p2877_p4 }
 0x3d5   : > { %p2751_p0 = por %p2750_p13, %p2749_p12 }
 0x3d6   : > { %p2747_p11 = pneg %p2746_p10 }
 0x3d7   : > { %p2753_p2 = por %p2752_p1, %p2751_p0 }
 0x3d9   : > { %p2754_p3 = pnand %p2753_p2, %p2747_p11 }
 0x3db   : > { %2757 = shalt.err (!%p2754_p3)
}
 0x3dc   : > { %2649 = dma.vmem_to_hbm [thread:$0]  (%p2877_p4), %s2070_s4, 128, %s3291_s30, %s2056_s5  }
 0x3dd PF: > { %p2655_p5 = scmp.ge.s32.totalorder %s2808_s17, 2  ;;  %s2081_s23 = sand.u32 1, %s2788_s12  }
 0x3de   : > { %s2082_s26 = scalar_lea.sflag [#allocation3], %s2081_s23 }
 0x3df   : > { %p2652_p6 = pnand %p2655_p5, %p2884_p8 }
 0x3e1   : > { %2783 = dma.done.wait (!%p2652_p6), %s2082_s26, 128  }
 0x3e2   : > { %2785 = vsyncadd (!%p2652_p6), %s2082_s26, 4294967168  ;;  %s16_s17 = sadd.s32 1, %s2808_s17   ;;  %s3343_s12 = smov %s2792_s13 }
 0x3e3   : > { %p13_p7 = scmp.ge.s32.totalorder %s16_s17, 4   ;;  %s3344_s13 = smov %s2796_s14 }
 0x3e4   : > { %s3345_s14 = smov %s2890_s25  ;;  %s3346_s15 = smov %s2804_s16 }
 0x3e5   : > { %s3347_s16 = smov %s3349_s20  ;;  %15 = sbr.rel (!%p13_p7) target bundleno = 4 (0x4), region = 82 }
 0x3ec   :  { %2087 = vsyncpa [#allocation3], 1 }
 0x3ed   :  { %2089 = vsyncpa [#allocation3 + $0x1], 1 }

</bundles_post_ra>
